<compile_context>
chip_gen: v7x
topology: tpu7x:2x2x1
jax: 0.10.0
libtpu: 0.0.40
codegen_flags: <defaults>
</compile_context>

<pallas_src>
import jax
import jax.numpy as jnp
import numpy as np
from jax.experimental import pallas as pl
from jax.experimental.pallas import tpu as pltpu


# ---------------------------------------------------------------------------
# trace-time helpers (numpy, float32 — identical math to generator_anchors())
# ---------------------------------------------------------------------------
def _cell_anchors_np(size, ratio):
    size = np.asarray(size, np.float32)
    ratio = np.asarray(ratio, np.float32)
    h_ratio = np.sqrt(ratio)
    w_ratio = 1.0 / h_ratio
    w_size = (w_ratio[:, None] * size[None, :]).reshape(-1)
    h_size = (h_ratio[:, None] * size[None, :]).reshape(-1)
    base = np.stack([-w_size, -h_size, w_size, h_size], axis=1) / 2.0
    return np.round(base).astype(np.float32)          # (A, 4)


def _level_anchors_np(cell, feat_h, feat_w, stride_h, stride_w):
    """Pure-numpy per-level anchors (H*W*A, 4) in float32 — mirrors map_anchors()."""
    ya = np.arange(feat_h, dtype=np.float32) * np.float32(stride_h)
    xa = np.arange(feat_w, dtype=np.float32) * np.float32(stride_w)
    yd, xd = np.meshgrid(ya, xa, indexing="ij")
    yd, xd = yd.reshape(-1), xd.reshape(-1)
    xy = np.stack([xd, yd, xd, yd], axis=1)
    return (cell[None, :, :] + xy[:, None, :]).reshape(-1, 4)


def _cdiv(a, b):
    return -(-a // b)


def _sublane_req(dtype):
    """Required sublane multiple for a packed output block of this dtype."""
    return {4: 8, 2: 16, 1: 32}.get(jnp.dtype(dtype).itemsize, 8)


def _choose_tile(feat_h, bytes_per_row, *, max_block_bytes, sublane, min_tiles):
    """Pick (tile_h, n_tiles).

    - whole-level block if the level is too short to split into >= min_tiles
      tiles of >= sublane rows (block == full dims is always layout-legal);
    - otherwise at least `min_tiles` balanced row-tiles (megacore / write-back
      pipelining) and enough tiles to keep each block under max_block_bytes.
    Ragged last tiles are handled by Pallas boundary masking.
    """
    if feat_h < sublane * min_tiles:
        return feat_h, 1
    n_tiles = max(min_tiles, _cdiv(feat_h * bytes_per_row, max_block_bytes))
    tile_h = _cdiv(_cdiv(feat_h, n_tiles), sublane) * sublane
    tile_h = max(tile_h, sublane)
    n_tiles = _cdiv(feat_h, tile_h)
    if n_tiles <= 1:
        return feat_h, 1
    return tile_h, n_tiles


# ---------------------------------------------------------------------------
# Pallas kernel: out[y, j] = (base_row[j] + y*stride_h * y_mask[j]).astype(out)
#   base_row[j] = cell[a, c] + x*stride_w   (j == (x*A + a)*4 + c)   [f32 const]
#   y_mask[j]   = 1.0 where c in {1, 3} else 0.0                     [f32 const]
#   y is derived in-kernel from program_id + iota (no y_pix DMA input).
# ---------------------------------------------------------------------------
def _make_anchor_kernel(stride_h):
    stride_h = np.float32(stride_h)

    def kernel(base_ref, ymask_ref, out_ref):
        tile_h = out_ref.shape[0]
        row = jax.lax.broadcasted_iota(jnp.int32, (tile_h, 1), 0)
        row = row + pl.program_id(0) * tile_h
        y_pix = row.astype(jnp.float32) * stride_h
        out_ref[...] = (base_ref[...] + y_pix * ymask_ref[...]).astype(out_ref.dtype)

    return kernel


def _map_level_anchors(cell, feat_h, feat_w, stride_h, stride_w, out_dtype,
                       *, max_block_bytes, min_grid_tiles):
    num_anchors = int(cell.shape[0])
    lane_w = feat_w * num_anchors * 4                  # lane-dense minor dim
    out_dtype = jnp.dtype(out_dtype)
    sublane = _sublane_req(out_dtype)
    # Keep 2x double-buffered output block comfortably under every generation's
    # scoped-VMEM default (16 MiB on v5e).
    max_block_bytes = max(1, min(int(max_block_bytes), 6 << 20))
    bytes_per_row = lane_w * out_dtype.itemsize
    tile_h, n_tiles = _choose_tile(feat_h, bytes_per_row,
                                   max_block_bytes=max_block_bytes,
                                   sublane=sublane,
                                   min_tiles=max(1, int(min_grid_tiles)))

    # trace-time constants (float32, exactly mirroring the PyTorch ops)
    x_pix = np.arange(feat_w, dtype=np.float32) * np.float32(stride_w)
    x_shift = np.zeros((feat_w, 1, 4), np.float32)
    x_shift[:, 0, 0] = x_pix
    x_shift[:, 0, 2] = x_pix
    base_row = (cell[None, :, :] + x_shift).reshape(1, lane_w)
    y_mask = np.tile(np.array([0.0, 1.0, 0.0, 1.0], np.float32),
                     feat_w * num_anchors).reshape(1, lane_w)

    slab = pl.pallas_call(
        _make_anchor_kernel(stride_h),
        out_shape=jax.ShapeDtypeStruct((feat_h, lane_w), out_dtype),
        grid=(n_tiles,),
        in_specs=[pl.BlockSpec((1, lane_w), lambda i: (0, 0)),
                  pl.BlockSpec((1, lane_w), lambda i: (0, 0))],
        out_specs=pl.BlockSpec((tile_h, lane_w), lambda i: (i, 0)),
        compiler_params=pltpu.CompilerParams(
            dimension_semantics=("parallel",)),
    )(jnp.asarray(base_row), jnp.asarray(y_mask))

    # row-major flatten of (H, W*A*4) == flat buffer of the (H*W*A, 4) result
    return slab.reshape(-1)


# ---------------------------------------------------------------------------
# forward (matches AnchorsGenerator.forward semantics)
# ---------------------------------------------------------------------------
def anchors_generator_forward(images, list_images_size, features,
                              sizes=(128, 256, 512), ratios=(0.5, 1.0, 2.0),
                              *, max_block_bytes=4 << 20,
                              min_pallas_bytes=256 << 10,
                              min_grid_tiles=2):
    # list_images_size is carried for API parity; the PyTorch forward never reads it.
    del list_images_size
    if not isinstance(sizes[0], (list, tuple)):
        sizes = tuple((s,) for s in sizes)
    if not isinstance(ratios[0], (list, tuple)):
        ratios = (ratios,) * len(sizes)

    image_h, image_w = images.shape[-2:]
    out_dtype = jnp.dtype(features[0].dtype)

    flat_levels = []
    for feat, size, ratio in zip(features, sizes, ratios):
        feat_h, feat_w = feat.shape[-2:]
        stride_h = image_h // feat_h
        stride_w = image_w // feat_w
        cell = _cell_anchors_np(size, ratio)           # always float32
        level_bytes = feat_h * feat_w * cell.shape[0] * 4 * out_dtype.itemsize
        if level_bytes < min_pallas_bytes:
            # Tiny level: dispatch + pipeline overhead dwarfs a few-KB write.
            # Bake it as a trace-time constant (f32 math, then cast — same as kernel).
            const = _level_anchors_np(cell, feat_h, feat_w, stride_h, stride_w)
            flat_levels.append(jnp.asarray(const.reshape(-1)).astype(out_dtype))
        else:
            flat_levels.append(
                _map_level_anchors(cell, feat_h, feat_w, stride_h, stride_w,
                                   out_dtype,
                                   max_block_bytes=max_block_bytes,
                                   min_grid_tiles=min_grid_tiles))

    # TODO(synk): fuse the cross-level concat into the kernels (write each level
    # directly into its offset of a single pre-allocated buffer) to drop this pass.
    all_anchors = jnp.concatenate(flat_levels, axis=0).reshape(-1, 4)
    return [all_anchors for _ in range(images.shape[0])]


# ---------------------------------------------------------------------------
# pure-numpy reference (mirrors the PyTorch code) for verification
# ---------------------------------------------------------------------------
def _ref_forward(images_shape, features_shapes, sizes=(128, 256, 512),
                 ratios=(0.5, 1.0, 2.0)):
    sizes = tuple((s,) for s in sizes)
    ratios = (ratios,) * len(sizes)
    image_h, image_w = images_shape[-2:]
    levels = []
    for (fh, fw), size, ratio in zip(features_shapes, sizes, ratios):
        cell = _cell_anchors_np(size, ratio)
        sh, sw = image_h // fh, image_w // fw
        levels.append(_level_anchors_np(cell, fh, fw, sh, sw))
    return np.concatenate(levels, axis=0)


if __name__ == "__main__":
    key = jax.random.PRNGKey(0)
    k_img, k_f0, k_f1, k_f2 = jax.random.split(key, 4)
    batch, channels = 2, 4

    # --- Test 1: fp32; largest level goes through Pallas (2 parallel row-tiles),
    #             the two small levels are constant-folded.
    images = jax.random.normal(k_img, (batch, channels, 512, 512), jnp.float32)
    list_images_size = [(512, 480), (500, 512)]
    features = [
        jax.random.normal(k_f0, (batch, channels, 128, 128), jnp.float32),
        jax.random.normal(k_f1, (batch, channels, 64, 64), jnp.float32),
        jax.random.normal(k_f2, (batch, channels, 32, 32), jnp.float32),
    ]
    anchors = anchors_generator_forward(images, list_images_size, features)
    anchors = [jax.block_until_ready(a) for a in anchors]
    ref = _ref_forward(images.shape, [f.shape[-2:] for f in features])
    assert len(anchors) == batch
    for a in anchors:
        assert a.shape == ref.shape and a.dtype == jnp.float32
        np.testing.assert_array_equal(np.asarray(a), ref)

    # --- Test 2: non-multiple-of-8 feature maps, all levels forced through Pallas
    #             (exercises ragged last-tile masking + whole-level odd blocks).
    images2 = jnp.zeros((1, channels, 100, 152), jnp.float32)
    features2 = [jnp.zeros((1, channels, 25, 38), jnp.float32),
                 jnp.zeros((1, channels, 13, 19), jnp.float32)]
    anchors2 = anchors_generator_forward(images2, [(100, 152)], features2,
                                         min_pallas_bytes=0)
    anchors2 = [jax.block_until_ready(a) for a in anchors2]
    ref2 = _ref_forward(images2.shape, [f.shape[-2:] for f in features2])
    np.testing.assert_array_equal(np.asarray(anchors2[0]), ref2)

    # --- Test 3: bf16 features -> in-kernel f32-compute / bf16-store cast with
    #             16-row sublane tiles.
    images3 = jnp.zeros((1, channels, 256, 256), jnp.float32)
    features3 = [jnp.zeros((1, channels, 64, 64), jnp.bfloat16),
                 jnp.zeros((1, channels, 32, 32), jnp.bfloat16)]
    anchors3 = anchors_generator_forward(images3, [(256, 256)], features3,
                                         min_pallas_bytes=0)
    anchors3 = [jax.block_until_ready(a) for a in anchors3]
    assert anchors3[0].dtype == jnp.bfloat16
    ref3 = _ref_forward(images3.shape, [f.shape[-2:] for f in features3])
    ref3_bf16 = jnp.asarray(ref3).astype(jnp.bfloat16).astype(jnp.float32)
    np.testing.assert_array_equal(
        np.asarray(anchors3[0].astype(jnp.float32)), np.asarray(ref3_bf16))

    print("KERNEL_OK")
</pallas_src>

<mosaic_0001>
module attributes {stable_mosaic.version = 11 : i64} {
  func.func @kernel(%arg0: i32, %arg1: memref<1x1536xf32, #tpu.memory_space<vmem>>, %arg2: memref<1x1536xf32, #tpu.memory_space<vmem>>, %arg3: memref<64x1536xf32, #tpu.memory_space<vmem>>) attributes {dimension_semantics = [#tpu.dimension_semantics<parallel>], iteration_bounds = array<i64: 2>, scalar_prefetch = 0 : i64, scratch_operands = 0 : i64, tpu.core_type = #tpu.core_type<tc>, window_params = [{pipeline_mode = #tpu.pipeline_mode<synchronous>, transform_indices = @transform_0, window_bounds = array<i64: 1, 1536>}, {pipeline_mode = #tpu.pipeline_mode<synchronous>, transform_indices = @transform_1, window_bounds = array<i64: 1, 1536>}, {transform_indices = @transform_2, window_bounds = array<i64: 64, 1536>}]} {
    %0 = tpu.iota {dimensions = array<i32: 0>} : vector<64x1xi32>
    %c64_i32 = arith.constant 64 : i32
    %1 = arith.muli %arg0, %c64_i32 : i32
    %2 = vector.broadcast %1 : i32 to vector<64x1xi32>
    %3 = arith.addi %0, %2 : vector<64x1xi32>
    %4 = arith.sitofp %3 : vector<64x1xi32> to vector<64x1xf32>
    %cst = arith.constant 4.000000e+00 : f32
    %5 = vector.broadcast %cst : f32 to vector<64x1xf32>
    %6 = arith.mulf %4, %5 : vector<64x1xf32>
    %c0 = arith.constant 0 : index
    %c0_0 = arith.constant 0 : index
    %7 = vector.load %arg1[%c0, %c0_0] : memref<1x1536xf32, #tpu.memory_space<vmem>>, vector<1x1536xf32>
    %c0_1 = arith.constant 0 : index
    %c0_2 = arith.constant 0 : index
    %8 = vector.load %arg2[%c0_1, %c0_2] : memref<1x1536xf32, #tpu.memory_space<vmem>>, vector<1x1536xf32>
    %9 = vector.broadcast %6 : vector<64x1xf32> to vector<64x1536xf32>
    %10 = vector.broadcast %8 : vector<1x1536xf32> to vector<64x1536xf32>
    %11 = arith.mulf %9, %10 : vector<64x1536xf32>
    %12 = vector.broadcast %7 : vector<1x1536xf32> to vector<64x1536xf32>
    %13 = arith.addf %12, %11 : vector<64x1536xf32>
    %c0_3 = arith.constant 0 : index
    %c0_4 = arith.constant 0 : index
    %14 = vector.load %arg3[%c0_3, %c0_4] : memref<64x1536xf32, #tpu.memory_space<vmem>>, vector<64x1536xf32>
    tpu.vector_store %arg3[%c0_3, %c0_4], %13 {strides = array<i32>} : memref<64x1536xf32, #tpu.memory_space<vmem>>, vector<64x1536xf32>,
    return
  }
  func.func @transform_0(%arg0: i32) -> (i32, i32) {
    %c0_i32 = arith.constant 0 : i32
    %c0_i32_0 = arith.constant 0 : i32
    %c0_i32_1 = arith.constant 0 : i32
    return %c0_i32, %c0_i32_0 : i32, i32
  }
  func.func @transform_1(%arg0: i32) -> (i32, i32) {
    %c0_i32 = arith.constant 0 : i32
    %c0_i32_0 = arith.constant 0 : i32
    %c0_i32_1 = arith.constant 0 : i32
    return %c0_i32, %c0_i32_0 : i32, i32
  }
  func.func @transform_2(%arg0: i32) -> (i32, i32) {
    %c0_i32 = arith.constant 0 : i32
    %c0_i32_0 = arith.constant 0 : i32
    return %arg0, %c0_i32 : i32, i32
  }
}

</mosaic_0001>

<bundles_post_ra>
// kernel: tpu_custom_call.1
= control target key start
LH: loop header
LB: loop body
LE: loop exit
PB: predicated region body
PF: predicated region fallthrough
CT: control target
= control target key end

     0   :  { %7 = vsyncpa [#allocation3], 0  ;;  %s1520_s0 = inlined_call_operand.hbm [shape: f32[1,1536], index: 0, kind: input, shape index: {}]   ;;  %s1521_s1 = inlined_call_operand.hbm [shape: f32[1,1536], index: 1, kind: input, shape index: {}]   ;;  %s1522_s2 = inlined_call_operand.hbm [shape: f32[128,1536], index: 2, kind: output, shape index: {}]  }
   0x1   :  { %8 = vsyncpa [#allocation6], 0 }
   0x2   :  { %9 = vsyncpa [#allocation4], 0 }
   0x3   :  { %11 = vsyncpa [#allocation4 + $0x1], 0  ;;  %s912_s9 = smov 0   ;;  %s914_s10 = smov 0  }
   0x4   :  { %s916_s11 = smov 0   ;;  %s918_s12 = smov 0  }
   0x5 LB: > { %s933_s13 = sadd.s32 4294967295, %s890_s12   ;;  %s687_s14 = sadd.s32 4294967294, %s890_s12   ;;  %s890_s12 = sphi %s918_s12, %s1540_s12   ;;  %s886_s11 = sphi %s916_s11, %s1539_s11   ;;  %s882_s10 = sphi %s914_s10, %s1538_s10   ;;  %s878_s9 = sphi %s912_s9, %s1537_s9  }
   0x6   : > { %s937_s15 = sadd.s32 1, %s890_s12   ;;  %s66_s16 = sadd.s32 1, %s886_s11 }
   0x7   : > { %s63_s17 = ssub.s32 %s890_s12, %s937_s15  ;;  %p76_p0 = scmp.ne.s32.totalorder %s886_s11, %s882_s10 }
   0x8   : > { %p64_p1 = scmp.eq.s32.totalorder %s63_s17, 0  ;;  %p77_p2 = scmp.eq.s32.totalorder %s933_s13, 1 }
   0x9   : > { %p82_p3 = scmp.ne.s32.totalorder %s882_s10, %s878_s9  ;;  %p83_p4 = scmp.eq.s32.totalorder %s687_s14, 1 }
   0xa   : > { %s948_s18 = scalar_select %p64_p1, %s886_s11, %s66_s16  }
   0xb   : > { %p950_p5 = por %p77_p2, %p76_p0  ;;  %p954_p6 = por %p83_p4, %p82_p3 }
   0xc   : > { %p688_p7 = scmp.ge.s32.totalorder %s890_s12, 1  ;;  %p90_p8 = scmp.lt.s32.totalorder %s890_s12, 3 }
   0xd   : > { %s1526_s19 = scalar_select %p950_p5, 1, 0 }
   0xe   : > { %s1527_s20 = scalar_select %p954_p6, 1, 0 }
   0xf   : > { %p1523_p9 = scmp.eq.s32.totalorder %s933_s13, 0  ;;  %p961_p10 = pnand %p688_p7, %p90_p8 }
  0x10   : > { %s892_s22 = smov [#allocation2]   ;;  %s893_s24 = smov [#allocation5]  }
  0x11   : > { %s1528_s21 = scalar_select %p961_p10, 1, 0 }
  0x12   : > { %s103_s23 = sshll.u32 %s892_s22, 4  ;;  %p712_p11 = pneg %p961_p10  ;;  %s104_s23 = int_to_ptr.vmem [resolvable:$true] %s103_s23 }
  0x13   : > { %s114_s25 = sshll.u32 %s893_s24, 4  ;;  %s764_s29 = scalar_lea.hbm %s1520_s0, 192  ;;  %s973_s25 = int_to_ptr.vmem [resolvable:$true] %s114_s25 }
  0x14   : > { %p969_p12 = pnand %p1523_p9, %p712_p11  ;;  %p765_p13 = scmp.ne.s32.totalorder %s1520_s0, %s764_s29 }
  0x15   : > { %p771_p3 = scmp.lt.u32.totalorder %s764_s29, %s1520_s0 }
  0x16   : > { %p766_p0 = pneg %p969_p12 }
  0x18   : > { %p767_p1 = pnand %p766_p0, %p765_p13 }
  0x1a   : > { %p768_p2 = pneg %p767_p1 }
  0x1c   : > { %p773_p4 = pnand %p771_p3, %p768_p2 }
  0x1e   : > { %776 = shalt.err (!%p773_p4)
}
  0x1f   : > { %s777_s6 = scalar_lea.vmem %s104_s23, 192  ;;  %p785_p9 = scmp.lt.s32.totalorder %s104_s23, %s104_s23 }
  0x20   : > { %p778_p7 = scmp.ne.s32.totalorder %s104_s23, %s777_s6  ;;  %p786_p6 = scmp.lt.s32.totalorder %s777_s6, %s777_s6 }
  0x22   : > { %p780_p8 = pnand %p778_p7, %p766_p0  ;;  %p787_p5 = por %p786_p6, %p785_p9 }
  0x24   : > { %p781_p11 = pneg %p780_p8 }
  0x26   : > { %p788_p10 = pnand %p787_p5, %p781_p11 }
  0x28   : > { %791 = shalt.err (!%p788_p10)
}
  0x29   : > { %715 = dma.hbm_to_vmem [thread:$0]  (!%p969_p12), %s1520_s0, 192, %s104_s23, [#allocation3]  }
  0x2a   : > { %s792_s17 = scalar_lea.hbm %s1521_s1, 192 }
  0x2b   : > { %p793_p13 = scmp.ne.s32.totalorder %s1521_s1, %s792_s17  ;;  %p799_p9 = scmp.lt.u32.totalorder %s792_s17, %s1521_s1 }
  0x2d   : > { %p795_p6 = pnand %p793_p13, %p766_p0 }
  0x2f   : > { %p796_p5 = pneg %p795_p6 }
  0x31   : > { %p801_p10 = pnand %p799_p9, %p796_p5 }
  0x33   : > { %804 = shalt.err (!%p801_p10)
}
  0x34   : > { %s805_s23 = scalar_lea.vmem %s973_s25, 192  ;;  %p813_p4 = scmp.lt.s32.totalorder %s973_s25, %s973_s25 }
  0x35   : > { %p806_p1 = scmp.ne.s32.totalorder %s973_s25, %s805_s23  ;;  %p814_p7 = scmp.lt.s32.totalorder %s805_s23, %s805_s23 }
  0x37   : > { %p808_p2 = pnand %p806_p1, %p766_p0  ;;  %p815_p8 = por %p814_p7, %p813_p4 }
  0x39   : > { %p809_p3 = pneg %p808_p2 }
  0x3b   : > { %p816_p11 = pnand %p815_p8, %p809_p3 }
  0x3d   : > { %819 = shalt.err (!%p816_p11)
}
  0x3e   : > { %718 = dma.hbm_to_vmem [thread:$0]  (!%p969_p12), %s1521_s1, 192, %s973_s25, [#allocation6]  }
  0x3f   : > { %p1530_p13 = scmp.ne.s32.totalorder %s1528_s21, 0 }
  0x40   : > { %p1531_p6 = scmp.eq.s32.totalorder (!%p1530_p13), %s933_s13, 0 }
  0x41   : > { %127 = sbr.rel (%p1530_p13) target bundleno = 171 (0xab), region = 28 }
  0x48   : > { %865 = dma.done.wait (%p1531_p6), [#allocation3], 192   ;;  %p1532_p0 = pmov %p1531_p6 }
  0x4a   : > { %867 = vsyncadd (%p1532_p0), [#allocation3], 4294967104  ;;  %p1533_p5 = pmov %p1532_p0 }
  0x4b   : > { %p1534_p9 = pmov %p1532_p0 }
  0x4c   : > { %869 = dma.done.wait (%p1533_p5), [#allocation6], 192  }
  0x4d   : > { %871 = vsyncadd (%p1534_p9), [#allocation6], 4294967104  ;;  %v149_v0 = vlaneseq  ;;  %s694_s25 = sshll.u32 %s933_s13, 6  ;;  %s145_s21 = sand.u32 1, %s882_s10   ;;  %v184_v13 = vld [vmem:[#allocation2] sm:$0xff]  ;;  %v186_v14 = vld [vmem:[#allocation5] sm:$0xff] }
  0x4e   : > { %v1033_v1 = vstv %s694_s25  ;;  %s1049_s26 = smul.u32 768, %s145_s21  ;;  %v185_v39 = vld [vmem:[#allocation2 + $0x8] sm:$0xf]  ;;  %v187_v40 = vld [vmem:[#allocation5 + $0x8] sm:$0xf]  ;;  %s1479_s8 = scalar_lea.sflag [#allocation4], %s145_s21 }
  0x4f   : > { %v1035_v2 = vshrl.u32 %v149_v0, 7  ;;  %s701_s4 = smul.u32 12288, %s933_s13  ;;  %p1535_p10 = scmp.ne.s32.totalorder %s1526_s19, 0 }
  0x50   : > { %s1101_s3 = scalar_lea.vmem [#allocation7], %s1049_s26  ;;  %s894_s16 = smov [#allocation7]  }
  0x51   : > { %v160_v3 = vadd.s32 %v1033_v1, %v1035_v2  ;;  %v192_v4 = vsub.s32 0, %v1035_v2  ;;  %v196_v5 = vsub.s32 1, %v1035_v2  ;;  %v200_v6 = vsub.s32 2, %v1035_v2  ;;  %s615_s5 = sshll.u32 %s1101_s3, 4  ;;  %s1469_s7 = scalar_lea.hbm %s1522_s2, %s701_s4  ;;  %s1471_s5 = int_to_ptr.vmem [resolvable:$true] %s615_s5 }
  0x52   : > { %v1044_v7 = vsub.s32 3, %v1035_v2  ;;  %v208_v8 = vsub.s32 4, %v1035_v2  ;;  %v212_v10 = vsub.s32 5, %v1035_v2  ;;  %v216_v11 = vsub.s32 6, %v1035_v2  ;;  %s820_s14 = scalar_lea.vmem %s1471_s5, 12288  ;;  %s824_s17 = sshll.u32 %s894_s16, 4  ;;  %s825_s17 = int_to_ptr.vmem [resolvable:$false] %s824_s17 }
  0x53   : > { %v168_v9 = vcvt.s32.f32 %v160_v3  ;;  %v220_v12 = vsub.s32 7, %v1035_v2  ;;  %v151_v15 = vadd.s32 8, %v1035_v2  ;;  %v152_v16 = vadd.s32 16, %v1035_v2  ;;  %p821_p12 = scmp.ne.s32.totalorder %s1471_s5, %s820_s14  ;;  %s826_s22 = scalar_lea.vmem %s825_s17, 24576 }
  0x54   : > { %v1057_v17 = vadd.s32 24, %v1035_v2  ;;  %v1060_v18 = vadd.s32 32, %v1035_v2  ;;  %v1062_v20 = vrot.slane %v186_v14, %v192_v4  ;;  %v1064_v21 = vrot.slane %v184_v13, %v192_v4  ;;  %p827_p3 = scmp.lt.s32.totalorder %s1471_s5, %s825_s17  ;;  %p828_p4 = scmp.lt.s32.totalorder %s826_s22, %s820_s14 }
  0x55   : > { %v176_v19 = vmul.f32 4.0, %v168_v9  ;;  %v1066_v22 = vrot.slane %v186_v14, %v196_v5  ;;  %v1068_v23 = vrot.slane %v184_v13, %v196_v5  ;;  %v1070_v24 = vrot.slane %v186_v14, %v200_v6  ;;  %p822_p1 = pnand %p821_p12, %p1535_p10 }
  0x56   : > { %v1072_v25 = vrot.slane %v184_v13, %v200_v6  ;;  %v1075_v26 = vrot.slane %v186_v14, %v1044_v7  ;;  %v1080_v29 = vrot.slane %v184_v13, %v1044_v7  ;;  %v1082_v30 = vrot.slane %v186_v14, %v208_v8  ;;  %p829_p7 = por %p828_p4, %p827_p3 }
  0x57   : > { %v250_v27 = vmul.f32 %v1062_v20, %v176_v19  ;;  %v251_v28 = vmul.f32 %v1066_v22, %v176_v19  ;;  %v252_v31 = vmul.f32 %v1070_v24, %v176_v19  ;;  %v1086_v33 = vrot.slane %v184_v13, %v208_v8  ;;  %p823_p2 = pneg %p822_p1 }
  0x58   : > { %v253_v32 = vmul.f32 %v1075_v26, %v176_v19  ;;  %v1088_v34 = vrot.slane %v186_v14, %v212_v10  ;;  %v254_v37 = vmul.f32 %v1082_v30, %v176_v19  ;;  %v1093_v38 = vrot.slane %v184_v13, %v212_v10 }
  0x59   : > { %v408_v35 = vadd.f32 %v1064_v21, %v250_v27  ;;  %v409_v36 = vadd.f32 %v1068_v23, %v251_v28  ;;  %v410_v41 = vadd.f32 %v1072_v25, %v252_v31  ;;  %v1098_v44 = vrot.slane %v186_v14, %v216_v11  ;;  %p830_p8 = pnand %p829_p7, %p823_p2 }
  0x5a   : > { %v411_v42 = vadd.f32 %v1080_v29, %v253_v32  ;;  %v255_v43 = vmul.f32 %v1088_v34, %v176_v19  ;;  %v412_v45 = vadd.f32 %v1086_v33, %v254_v37  ;;  %v1106_v46 = vrot.slane %v184_v13, %v216_v11 }
  0x5b   : > { %504 = vst [vmem:[%s1101_s3] sm:$0xff] %v408_v35  ;;  %505 = vst [vmem:[%s1101_s3 + $0x8] sm:$0xff] %v409_v36  ;;  %v1108_v47 = vrot.slane %v186_v14, %v220_v12  ;;  %v1110_v48 = vrot.slane %v184_v13, %v220_v12  ;;  %v256_v50 = vmul.f32 %v1098_v44, %v176_v19  ;;  %v155_v14 = vadd.s32 40, %v1035_v2 }
  0x5c   : > { %506 = vst [vmem:[%s1101_s3 + $0x10] sm:$0xff] %v410_v41  ;;  %507 = vst [vmem:[%s1101_s3 + $0x18] sm:$0xff] %v411_v42  ;;  %v413_v49 = vadd.f32 %v1093_v38, %v255_v43  ;;  %v1116_v51 = vrot.slane %v187_v40, %v192_v4  ;;  %v1118_v52 = vrot.slane %v185_v39, %v192_v4  ;;  %v157_v27 = vadd.s32 56, %v1035_v2 }
  0x5d   : > { %508 = vst [vmem:[%s1101_s3 + $0x20] sm:$0xff] %v412_v45  ;;  %v257_v53 = vmul.f32 %v1108_v47, %v176_v19  ;;  %v1122_v54 = vrot.slane %v187_v40, %v196_v5  ;;  %v1124_v55 = vrot.slane %v185_v39, %v196_v5  ;;  %v1126_v56 = vrot.slane %v187_v40, %v200_v6 }
  0x5e   : > { %509 = vst [vmem:[%s1101_s3 + $0x28] sm:$0xff] %v413_v49  ;;  %v414_v57 = vadd.f32 %v1106_v46, %v256_v50  ;;  %v258_v58 = vmul.f32 %v1116_v51, %v176_v19  ;;  %v1131_v59 = vrot.slane %v185_v39, %v200_v6  ;;  %v1134_v60 = vrot.slane %v187_v40, %v1044_v7 }
  0x5f   : > { %v415_v61 = vadd.f32 %v1110_v48, %v257_v53  ;;  %v259_v62 = vmul.f32 %v1122_v54, %v176_v19  ;;  %v260_v63 = vmul.f32 %v1126_v56, %v176_v19  ;;  %v1140_v0 = vrot.slane %v185_v39, %v1044_v7 }
  0x60   : > { %510 = vst [vmem:[%s1101_s3 + $0x30] sm:$0xff] %v414_v57  ;;  %v416_v3 = vadd.f32 %v1118_v52, %v258_v58  ;;  %v261_v4 = vmul.f32 %v1134_v60, %v176_v19  ;;  %v161_v5 = vadd.s32 %v1033_v1, %v151_v15  ;;  %v162_v6 = vadd.s32 %v1033_v1, %v152_v16 }
  0x61   : > { %511 = vst [vmem:[%s1101_s3 + $0x38] sm:$0xff] %v415_v61  ;;  %v417_v8 = vadd.f32 %v1124_v55, %v259_v62  ;;  %v418_v9 = vadd.f32 %v1131_v59, %v260_v63  ;;  %v163_v7 = vadd.s32 %v1033_v1, %v1057_v17  ;;  %v164_v10 = vadd.s32 %v1033_v1, %v1060_v18 }
  0x62   : > { %512 = vst [vmem:[%s1101_s3 + $0x40] sm:$0xff] %v416_v3  ;;  %v419_v11 = vadd.f32 %v1140_v0, %v261_v4  ;;  %v169_v12 = vcvt.s32.f32 %v161_v5  ;;  %v170_v13 = vcvt.s32.f32 %v162_v6  ;;  %v156_v19 = vadd.s32 48, %v1035_v2 }
  0x63   : > { %513 = vst [vmem:[%s1101_s3 + $0x48] sm:$0xff] %v417_v8  ;;  %514 = vst [vmem:[%s1101_s3 + $0x50] sm:$0xff] %v418_v9  ;;  %v171_v15 = vcvt.s32.f32 %v163_v7  ;;  %v172_v16 = vcvt.s32.f32 %v164_v10  ;;  %v1163_v18 = vadd.s32 %v1033_v1, %v155_v14  ;;  %v1173_v36 = vadd.s32 %v1033_v1, %v157_v27 }
  0x64   : > { %515 = vst [vmem:[%s1101_s3 + $0x58] sm:$0xff] %v419_v11  ;;  %v177_v17 = vmul.f32 4.0, %v169_v12  ;;  %v178_v28 = vmul.f32 4.0, %v170_v13  ;;  %v1170_v35 = vadd.s32 %v1033_v1, %v156_v19 }
  0x65   : > { %v1165_v31 = vmul.f32 4.0, %v171_v15  ;;  %v1167_v32 = vmul.f32 4.0, %v172_v16 }
  0x66   : > { %v262_v37 = vmul.f32 %v1062_v20, %v177_v17  ;;  %v263_v2 = vmul.f32 %v1066_v22, %v177_v17  ;;  %v264_v39 = vmul.f32 %v1070_v24, %v177_v17  ;;  %v265_v40 = vmul.f32 %v1075_v26, %v177_v17 }
  0x67   : > { %v266_v41 = vmul.f32 %v1082_v30, %v177_v17  ;;  %v267_v42 = vmul.f32 %v1088_v34, %v177_v17  ;;  %v268_v43 = vmul.f32 %v1098_v44, %v177_v17  ;;  %v269_v1 = vmul.f32 %v1108_v47, %v177_v17 }
  0x68   : > { %v420_v45 = vadd.f32 %v1064_v21, %v262_v37  ;;  %v421_v49 = vadd.f32 %v1068_v23, %v263_v2  ;;  %v422_v50 = vadd.f32 %v1072_v25, %v264_v39  ;;  %v423_v53 = vadd.f32 %v1080_v29, %v265_v40 }
  0x69   : > { %v424_v57 = vadd.f32 %v1086_v33, %v266_v41  ;;  %v425_v58 = vadd.f32 %v1093_v38, %v267_v42  ;;  %v426_v61 = vadd.f32 %v1106_v46, %v268_v43  ;;  %v427_v62 = vadd.f32 %v1110_v48, %v269_v1 }
  0x6a   : > { %516 = vst [vmem:[%s1101_s3 + $0x60] sm:$0xff] %v420_v45  ;;  %517 = vst [vmem:[%s1101_s3 + $0x68] sm:$0xff] %v421_v49  ;;  %v270_v63 = vmul.f32 %v1116_v51, %v177_v17  ;;  %v271_v3 = vmul.f32 %v1122_v54, %v177_v17  ;;  %v272_v4 = vmul.f32 %v1126_v56, %v177_v17 }
  0x6b   : > { %518 = vst [vmem:[%s1101_s3 + $0x70] sm:$0xff] %v422_v50  ;;  %519 = vst [vmem:[%s1101_s3 + $0x78] sm:$0xff] %v423_v53  ;;  %v273_v5 = vmul.f32 %v1134_v60, %v177_v17  ;;  %v274_v6 = vmul.f32 %v1062_v20, %v178_v28  ;;  %v275_v8 = vmul.f32 %v1066_v22, %v178_v28 }
  0x6c   : > { %520 = vst [vmem:[%s1101_s3 + $0x80] sm:$0xff] %v424_v57  ;;  %521 = vst [vmem:[%s1101_s3 + $0x88] sm:$0xff] %v425_v58  ;;  %v276_v9 = vmul.f32 %v1070_v24, %v178_v28  ;;  %v277_v7 = vmul.f32 %v1075_v26, %v178_v28  ;;  %v428_v10 = vadd.f32 %v1118_v52, %v270_v63 }
  0x6d   : > { %522 = vst [vmem:[%s1101_s3 + $0x90] sm:$0xff] %v426_v61  ;;  %523 = vst [vmem:[%s1101_s3 + $0x98] sm:$0xff] %v427_v62  ;;  %v429_v11 = vadd.f32 %v1124_v55, %v271_v3  ;;  %v430_v12 = vadd.f32 %v1131_v59, %v272_v4  ;;  %v431_v13 = vadd.f32 %v1140_v0, %v273_v5 }
  0x6e   : > { %v432_v14 = vadd.f32 %v1064_v21, %v274_v6  ;;  %v433_v15 = vadd.f32 %v1068_v23, %v275_v8  ;;  %v434_v16 = vadd.f32 %v1072_v25, %v276_v9  ;;  %v435_v19 = vadd.f32 %v1080_v29, %v277_v7  ;;  %524 = vst [vmem:[%s1101_s3 + $0xa0] sm:$0xff] %v428_v10 }
  0x6f   : > { %525 = vst [vmem:[%s1101_s3 + $0xa8] sm:$0xff] %v429_v11  ;;  %526 = vst [vmem:[%s1101_s3 + $0xb0] sm:$0xff] %v430_v12  ;;  %v278_v27 = vmul.f32 %v1082_v30, %v178_v28  ;;  %v279_v17 = vmul.f32 %v1088_v34, %v178_v28  ;;  %v280_v37 = vmul.f32 %v1098_v44, %v178_v28 }
  0x70   : > { %527 = vst [vmem:[%s1101_s3 + $0xb8] sm:$0xff] %v431_v13  ;;  %v281_v2 = vmul.f32 %v1108_v47, %v178_v28  ;;  %528 = vst [vmem:[%s1101_s3 + $0xc0] sm:$0xff] %v432_v14  ;;  %v282_v39 = vmul.f32 %v1116_v51, %v178_v28  ;;  %v283_v40 = vmul.f32 %v1122_v54, %v178_v28 }
  0x71   : > { %529 = vst [vmem:[%s1101_s3 + $0xc8] sm:$0xff] %v433_v15  ;;  %530 = vst [vmem:[%s1101_s3 + $0xd0] sm:$0xff] %v434_v16  ;;  %v284_v41 = vmul.f32 %v1126_v56, %v178_v28  ;;  %v285_v42 = vmul.f32 %v1134_v60, %v178_v28  ;;  %v436_v43 = vadd.f32 %v1086_v33, %v278_v27 }
  0x72   : > { %531 = vst [vmem:[%s1101_s3 + $0xd8] sm:$0xff] %v435_v19  ;;  %v437_v1 = vadd.f32 %v1093_v38, %v279_v17  ;;  %v438_v45 = vadd.f32 %v1106_v46, %v280_v37  ;;  %v439_v49 = vadd.f32 %v1110_v48, %v281_v2  ;;  %v440_v50 = vadd.f32 %v1118_v52, %v282_v39 }
  0x73   : > { %v441_v53 = vadd.f32 %v1124_v55, %v283_v40  ;;  %v442_v57 = vadd.f32 %v1131_v59, %v284_v41  ;;  %v443_v28 = vadd.f32 %v1140_v0, %v285_v42  ;;  %532 = vst [vmem:[%s1101_s3 + $0xe0] sm:$0xff] %v436_v43  ;;  %v286_v58 = vmul.f32 %v1062_v20, %v1165_v31 }
  0x74   : > { %533 = vst [vmem:[%s1101_s3 + $0xe8] sm:$0xff] %v437_v1  ;;  %534 = vst [vmem:[%s1101_s3 + $0xf0] sm:$0xff] %v438_v45  ;;  %v287_v61 = vmul.f32 %v1066_v22, %v1165_v31  ;;  %v288_v62 = vmul.f32 %v1070_v24, %v1165_v31  ;;  %v289_v63 = vmul.f32 %v1075_v26, %v1165_v31 }
  0x75   : > { %535 = vst [vmem:[%s1101_s3 + $0xf8] sm:$0xff] %v439_v49  ;;  %536 = vst [vmem:[%s1101_s3 + $0x100] sm:$0xff] %v440_v50  ;;  %v290_v3 = vmul.f32 %v1082_v30, %v1165_v31  ;;  %v291_v4 = vmul.f32 %v1088_v34, %v1165_v31  ;;  %v292_v5 = vmul.f32 %v1098_v44, %v1165_v31 }
  0x76   : > { %537 = vst [vmem:[%s1101_s3 + $0x108] sm:$0xff] %v441_v53  ;;  %538 = vst [vmem:[%s1101_s3 + $0x110] sm:$0xff] %v442_v57  ;;  %v293_v6 = vmul.f32 %v1108_v47, %v1165_v31  ;;  %v444_v8 = vadd.f32 %v1064_v21, %v286_v58  ;;  %v445_v9 = vadd.f32 %v1068_v23, %v287_v61 }
  0x77   : > { %539 = vst [vmem:[%s1101_s3 + $0x118] sm:$0xff] %v443_v28  ;;  %v446_v7 = vadd.f32 %v1072_v25, %v288_v62  ;;  %v447_v10 = vadd.f32 %v1080_v29, %v289_v63  ;;  %v448_v11 = vadd.f32 %v1086_v33, %v290_v3  ;;  %v449_v12 = vadd.f32 %v1093_v38, %v291_v4 }
  0x78   : > { %v450_v13 = vadd.f32 %v1106_v46, %v292_v5  ;;  %v451_v14 = vadd.f32 %v1110_v48, %v293_v6  ;;  %540 = vst [vmem:[%s1101_s3 + $0x120] sm:$0xff] %v444_v8  ;;  %541 = vst [vmem:[%s1101_s3 + $0x128] sm:$0xff] %v445_v9  ;;  %v294_v15 = vmul.f32 %v1116_v51, %v1165_v31 }
  0x79   : > { %542 = vst [vmem:[%s1101_s3 + $0x130] sm:$0xff] %v446_v7  ;;  %543 = vst [vmem:[%s1101_s3 + $0x138] sm:$0xff] %v447_v10  ;;  %v295_v16 = vmul.f32 %v1122_v54, %v1165_v31  ;;  %v296_v19 = vmul.f32 %v1126_v56, %v1165_v31  ;;  %v297_v27 = vmul.f32 %v1134_v60, %v1165_v31  ;;  %v173_v10 = vcvt.s32.f32 %v1163_v18 }
  0x7a   : > { %544 = vst [vmem:[%s1101_s3 + $0x140] sm:$0xff] %v448_v11  ;;  %545 = vst [vmem:[%s1101_s3 + $0x148] sm:$0xff] %v449_v12  ;;  %v298_v17 = vmul.f32 %v1062_v20, %v1167_v32  ;;  %v299_v37 = vmul.f32 %v1066_v22, %v1167_v32  ;;  %v300_v2 = vmul.f32 %v1070_v24, %v1167_v32  ;;  %v174_v11 = vcvt.s32.f32 %v1170_v35 }
  0x7b   : > { %546 = vst [vmem:[%s1101_s3 + $0x150] sm:$0xff] %v450_v13  ;;  %547 = vst [vmem:[%s1101_s3 + $0x158] sm:$0xff] %v451_v14  ;;  %v301_v31 = vmul.f32 %v1075_v26, %v1167_v32  ;;  %v452_v39 = vadd.f32 %v1118_v52, %v294_v15  ;;  %v453_v40 = vadd.f32 %v1124_v55, %v295_v16  ;;  %v175_v12 = vcvt.s32.f32 %v1173_v36 }
  0x7c   : > { %v454_v41 = vadd.f32 %v1131_v59, %v296_v19  ;;  %v455_v42 = vadd.f32 %v1140_v0, %v297_v27  ;;  %v456_v43 = vadd.f32 %v1064_v21, %v298_v17  ;;  %v457_v1 = vadd.f32 %v1068_v23, %v299_v37 }
  0x7d   : > { %v458_v45 = vadd.f32 %v1072_v25, %v300_v2  ;;  %v459_v49 = vadd.f32 %v1080_v29, %v301_v31  ;;  %548 = vst [vmem:[%s1101_s3 + $0x160] sm:$0xff] %v452_v39  ;;  %549 = vst [vmem:[%s1101_s3 + $0x168] sm:$0xff] %v453_v40  ;;  %v302_v50 = vmul.f32 %v1082_v30, %v1167_v32  ;;  %v181_v13 = vmul.f32 4.0, %v173_v10 }
  0x7e   : > { %550 = vst [vmem:[%s1101_s3 + $0x170] sm:$0xff] %v454_v41  ;;  %551 = vst [vmem:[%s1101_s3 + $0x178] sm:$0xff] %v455_v42  ;;  %v303_v53 = vmul.f32 %v1088_v34, %v1167_v32  ;;  %v304_v57 = vmul.f32 %v1098_v44, %v1167_v32  ;;  %v305_v28 = vmul.f32 %v1108_v47, %v1167_v32  ;;  %v182_v14 = vmul.f32 4.0, %v174_v11 }
  0x7f   : > { %552 = vst [vmem:[%s1101_s3 + $0x180] sm:$0xff] %v456_v43  ;;  %553 = vst [vmem:[%s1101_s3 + $0x188] sm:$0xff] %v457_v1  ;;  %v306_v58 = vmul.f32 %v1116_v51, %v1167_v32  ;;  %v307_v61 = vmul.f32 %v1122_v54, %v1167_v32  ;;  %v308_v62 = vmul.f32 %v1126_v56, %v1167_v32  ;;  %v1346_v15 = vmul.f32 4.0, %v175_v12 }
  0x80   : > { %554 = vst [vmem:[%s1101_s3 + $0x190] sm:$0xff] %v458_v45  ;;  %555 = vst [vmem:[%s1101_s3 + $0x198] sm:$0xff] %v459_v49  ;;  %v309_v63 = vmul.f32 %v1134_v60, %v1167_v32  ;;  %v460_v3 = vadd.f32 %v1086_v33, %v302_v50  ;;  %v461_v4 = vadd.f32 %v1093_v38, %v303_v53 }
  0x81   : > { %v462_v5 = vadd.f32 %v1106_v46, %v304_v57  ;;  %v463_v6 = vadd.f32 %v1110_v48, %v305_v28  ;;  %v464_v8 = vadd.f32 %v1118_v52, %v306_v58  ;;  %v465_v9 = vadd.f32 %v1124_v55, %v307_v61 }
  0x82   : > { %v466_v7 = vadd.f32 %v1131_v59, %v308_v62  ;;  %v467_v32 = vadd.f32 %v1140_v0, %v309_v63  ;;  %556 = vst [vmem:[%s1101_s3 + $0x1a0] sm:$0xff] %v460_v3  ;;  %557 = vst [vmem:[%s1101_s3 + $0x1a8] sm:$0xff] %v461_v4  ;;  %v310_v16 = vmul.f32 %v1062_v20, %v181_v13 }
  0x83   : > { %558 = vst [vmem:[%s1101_s3 + $0x1b0] sm:$0xff] %v462_v5  ;;  %559 = vst [vmem:[%s1101_s3 + $0x1b8] sm:$0xff] %v463_v6  ;;  %v311_v19 = vmul.f32 %v1066_v22, %v181_v13  ;;  %v312_v18 = vmul.f32 %v1070_v24, %v181_v13  ;;  %v313_v35 = vmul.f32 %v1075_v26, %v181_v13 }
  0x84   : > { %560 = vst [vmem:[%s1101_s3 + $0x1c0] sm:$0xff] %v464_v8  ;;  %561 = vst [vmem:[%s1101_s3 + $0x1c8] sm:$0xff] %v465_v9  ;;  %v314_v36 = vmul.f32 %v1082_v30, %v181_v13  ;;  %v315_v27 = vmul.f32 %v1088_v34, %v181_v13  ;;  %v316_v17 = vmul.f32 %v1098_v44, %v181_v13 }
  0x85   : > { %562 = vst [vmem:[%s1101_s3 + $0x1d0] sm:$0xff] %v466_v7  ;;  %563 = vst [vmem:[%s1101_s3 + $0x1d8] sm:$0xff] %v467_v32  ;;  %v317_v37 = vmul.f32 %v1108_v47, %v181_v13  ;;  %v468_v2 = vadd.f32 %v1064_v21, %v310_v16  ;;  %v469_v31 = vadd.f32 %v1068_v23, %v311_v19 }
  0x86   : > { %v470_v39 = vadd.f32 %v1072_v25, %v312_v18  ;;  %v471_v40 = vadd.f32 %v1080_v29, %v313_v35  ;;  %v472_v41 = vadd.f32 %v1086_v33, %v314_v36  ;;  %v473_v42 = vadd.f32 %v1093_v38, %v315_v27 }
  0x87   : > { %v474_v43 = vadd.f32 %v1106_v46, %v316_v17  ;;  %v475_v1 = vadd.f32 %v1110_v48, %v317_v37  ;;  %564 = vst [vmem:[%s1101_s3 + $0x1e0] sm:$0xff] %v468_v2  ;;  %565 = vst [vmem:[%s1101_s3 + $0x1e8] sm:$0xff] %v469_v31  ;;  %v318_v45 = vmul.f32 %v1116_v51, %v181_v13 }
  0x88   : > { %566 = vst [vmem:[%s1101_s3 + $0x1f0] sm:$0xff] %v470_v39  ;;  %567 = vst [vmem:[%s1101_s3 + $0x1f8] sm:$0xff] %v471_v40  ;;  %v319_v49 = vmul.f32 %v1122_v54, %v181_v13  ;;  %v320_v50 = vmul.f32 %v1126_v56, %v181_v13  ;;  %v321_v53 = vmul.f32 %v1134_v60, %v181_v13 }
  0x89   : > { %568 = vst [vmem:[%s1101_s3 + $0x200] sm:$0xff] %v472_v41  ;;  %569 = vst [vmem:[%s1101_s3 + $0x208] sm:$0xff] %v473_v42  ;;  %v322_v57 = vmul.f32 %v1062_v20, %v182_v14  ;;  %v323_v28 = vmul.f32 %v1066_v22, %v182_v14  ;;  %v324_v58 = vmul.f32 %v1070_v24, %v182_v14 }
  0x8a   : > { %570 = vst [vmem:[%s1101_s3 + $0x210] sm:$0xff] %v474_v43  ;;  %571 = vst [vmem:[%s1101_s3 + $0x218] sm:$0xff] %v475_v1  ;;  %v325_v61 = vmul.f32 %v1075_v26, %v182_v14  ;;  %v476_v62 = vadd.f32 %v1118_v52, %v318_v45  ;;  %v477_v63 = vadd.f32 %v1124_v55, %v319_v49 }
  0x8b   : > { %v478_v3 = vadd.f32 %v1131_v59, %v320_v50  ;;  %v479_v4 = vadd.f32 %v1140_v0, %v321_v53  ;;  %v480_v5 = vadd.f32 %v1064_v21, %v322_v57  ;;  %v481_v6 = vadd.f32 %v1068_v23, %v323_v28 }
  0x8c   : > { %v482_v8 = vadd.f32 %v1072_v25, %v324_v58  ;;  %v483_v9 = vadd.f32 %v1080_v29, %v325_v61  ;;  %572 = vst [vmem:[%s1101_s3 + $0x220] sm:$0xff] %v476_v62  ;;  %573 = vst [vmem:[%s1101_s3 + $0x228] sm:$0xff] %v477_v63  ;;  %v326_v7 = vmul.f32 %v1082_v30, %v182_v14 }
  0x8d   : > { %574 = vst [vmem:[%s1101_s3 + $0x230] sm:$0xff] %v478_v3  ;;  %575 = vst [vmem:[%s1101_s3 + $0x238] sm:$0xff] %v479_v4  ;;  %v327_v32 = vmul.f32 %v1088_v34, %v182_v14  ;;  %v328_v10 = vmul.f32 %v1098_v44, %v182_v14  ;;  %v329_v11 = vmul.f32 %v1108_v47, %v182_v14 }
  0x8e   : > { %576 = vst [vmem:[%s1101_s3 + $0x240] sm:$0xff] %v480_v5  ;;  %577 = vst [vmem:[%s1101_s3 + $0x248] sm:$0xff] %v481_v6  ;;  %v330_v12 = vmul.f32 %v1116_v51, %v182_v14  ;;  %v331_v13 = vmul.f32 %v1122_v54, %v182_v14  ;;  %v332_v16 = vmul.f32 %v1126_v56, %v182_v14 }
  0x8f   : > { %578 = vst [vmem:[%s1101_s3 + $0x250] sm:$0xff] %v482_v8  ;;  %579 = vst [vmem:[%s1101_s3 + $0x258] sm:$0xff] %v483_v9  ;;  %v333_v19 = vmul.f32 %v1134_v60, %v182_v14  ;;  %v484_v18 = vadd.f32 %v1086_v33, %v326_v7  ;;  %v485_v35 = vadd.f32 %v1093_v38, %v327_v32 }
  0x90   : > { %v486_v36 = vadd.f32 %v1106_v46, %v328_v10  ;;  %v487_v27 = vadd.f32 %v1110_v48, %v329_v11  ;;  %v488_v17 = vadd.f32 %v1118_v52, %v330_v12  ;;  %v489_v37 = vadd.f32 %v1124_v55, %v331_v13 }
  0x91   : > { %v490_v2 = vadd.f32 %v1131_v59, %v332_v16  ;;  %v491_v14 = vadd.f32 %v1140_v0, %v333_v19  ;;  %580 = vst [vmem:[%s1101_s3 + $0x260] sm:$0xff] %v484_v18  ;;  %581 = vst [vmem:[%s1101_s3 + $0x268] sm:$0xff] %v485_v35  ;;  %v334_v31 = vmul.f32 %v1062_v20, %v1346_v15 }
  0x92   : > { %582 = vst [vmem:[%s1101_s3 + $0x270] sm:$0xff] %v486_v36  ;;  %583 = vst [vmem:[%s1101_s3 + $0x278] sm:$0xff] %v487_v27  ;;  %v335_v39 = vmul.f32 %v1066_v22, %v1346_v15  ;;  %v336_v40 = vmul.f32 %v1070_v24, %v1346_v15  ;;  %v337_v41 = vmul.f32 %v1075_v26, %v1346_v15 }
  0x93   : > { %584 = vst [vmem:[%s1101_s3 + $0x280] sm:$0xff] %v488_v17  ;;  %585 = vst [vmem:[%s1101_s3 + $0x288] sm:$0xff] %v489_v37  ;;  %v338_v20 = vmul.f32 %v1082_v30, %v1346_v15  ;;  %v339_v22 = vmul.f32 %v1088_v34, %v1346_v15  ;;  %v340_v24 = vmul.f32 %v1098_v44, %v1346_v15 }
  0x94   : > { %586 = vst [vmem:[%s1101_s3 + $0x290] sm:$0xff] %v490_v2  ;;  %587 = vst [vmem:[%s1101_s3 + $0x298] sm:$0xff] %v491_v14  ;;  %v341_v26 = vmul.f32 %v1108_v47, %v1346_v15  ;;  %v492_v42 = vadd.f32 %v1064_v21, %v334_v31  ;;  %v493_v43 = vadd.f32 %v1068_v23, %v335_v39 }
  0x95   : > { %v494_v1 = vadd.f32 %v1072_v25, %v336_v40  ;;  %v495_v30 = vadd.f32 %v1080_v29, %v337_v41  ;;  %v496_v34 = vadd.f32 %v1086_v33, %v338_v20  ;;  %v497_v44 = vadd.f32 %v1093_v38, %v339_v22 }
  0x96   : > { %v498_v45 = vadd.f32 %v1106_v46, %v340_v24  ;;  %v499_v47 = vadd.f32 %v1110_v48, %v341_v26  ;;  %588 = vst [vmem:[%s1101_s3 + $0x2a0] sm:$0xff] %v492_v42  ;;  %589 = vst [vmem:[%s1101_s3 + $0x2a8] sm:$0xff] %v493_v43  ;;  %v342_v21 = vmul.f32 %v1116_v51, %v1346_v15 }
  0x97   : > { %590 = vst [vmem:[%s1101_s3 + $0x2b0] sm:$0xff] %v494_v1  ;;  %591 = vst [vmem:[%s1101_s3 + $0x2b8] sm:$0xff] %v495_v30  ;;  %v343_v23 = vmul.f32 %v1122_v54, %v1346_v15  ;;  %v344_v25 = vmul.f32 %v1126_v56, %v1346_v15  ;;  %v345_v29 = vmul.f32 %v1134_v60, %v1346_v15 }
  0x98   : > { %592 = vst [vmem:[%s1101_s3 + $0x2c0] sm:$0xff] %v496_v34  ;;  %593 = vst [vmem:[%s1101_s3 + $0x2c8] sm:$0xff] %v497_v44  ;;  %v500_v33 = vadd.f32 %v1118_v52, %v342_v21 }
  0x99   : > { %594 = vst [vmem:[%s1101_s3 + $0x2d0] sm:$0xff] %v498_v45  ;;  %595 = vst [vmem:[%s1101_s3 + $0x2d8] sm:$0xff] %v499_v47  ;;  %v501_v38 = vadd.f32 %v1124_v55, %v343_v23  ;;  %v502_v46 = vadd.f32 %v1131_v59, %v344_v25  ;;  %v503_v48 = vadd.f32 %v1140_v0, %v345_v29 }
  0x9a   : > { %596 = vst [vmem:[%s1101_s3 + $0x2e0] sm:$0xff] %v500_v33 }
  0x9b   : > { %597 = vst [vmem:[%s1101_s3 + $0x2e8] sm:$0xff] %v501_v38  ;;  %598 = vst [vmem:[%s1101_s3 + $0x2f0] sm:$0xff] %v502_v46 }
  0x9c   : > { %599 = vst [vmem:[%s1101_s3 + $0x2f8] sm:$0xff] %v503_v48 }
  0x9d   : > { %833 = shalt.err (!%p830_p8)
}
  0x9e   : > { %s834_s24 = scalar_lea.hbm %s1469_s7, 12288  ;;  %s838_s23 = scalar_lea.hbm %s1522_s2, 24576 }
  0x9f   : > { %p835_p11 = scmp.ne.s32.totalorder %s1469_s7, %s834_s24  ;;  %p839_p0 = scmp.lt.u32.totalorder %s1469_s7, %s1522_s2 }
  0xa0   : > { %p840_p5 = scmp.lt.u32.totalorder %s838_s23, %s834_s24  ;;  %p842_p12 = scmp.lt.u32.totalorder %s834_s24, %s1469_s7 }
  0xa1   : > { %p836_p13 = pnand %p835_p11, %p1535_p10 }
  0xa2   : > { %p841_p9 = por %p840_p5, %p839_p0 }
  0xa3   : > { %p837_p6 = pneg %p836_p13 }
  0xa4   : > { %p843_p1 = por %p842_p12, %p841_p9 }
  0xa6   : > { %p844_p2 = pnand %p843_p1, %p837_p6 }
  0xa8   : > { %847 = shalt.err (!%p844_p2)
}
  0xa9   : > { %s895_s25 = smov 1536   ;;  %s896_s21 = smov 96  }
  0xaa   : > { %710 = dma.vmem_to_hbm [thread:$0]  (%p1535_p10), %s1471_s5, 12288, %s1469_s7, %s1479_s8, %s895_s25, %s895_s25, %s896_s21  }
  0xab PF: > { %p727_p3 = scmp.ge.s32.totalorder %s890_s12, 2  ;;  %s630_s26 = sand.u32 1, %s878_s9  }
  0xac   : > { %p1536_p4 = scmp.ne.s32.totalorder %s1527_s20, 0  ;;  %s631_s3 = scalar_lea.sflag [#allocation4], %s630_s26 }
  0xae   : > { %p720_p7 = pnand %p727_p3, %p1536_p4 }
  0xb0   : > { %873 = dma.done.wait (!%p720_p7), %s631_s3, 12288  }
  0xb1   : > { %875 = vsyncadd (!%p720_p7), %s631_s3, 4294955008  ;;  %p14_p8 = scmp.ge.s32.totalorder %s937_s15, 4   ;;  %s1537_s9 = smov %s882_s10 }
  0xb2   : > { %s1538_s10 = smov %s886_s11  ;;  %s1539_s11 = smov %s948_s18 }
  0xb3   : > { %s1540_s12 = smov %s937_s15  ;;  %16 = sbr.rel (!%p14_p8) target bundleno = 5 (0x5), region = 69 }
  0xba   :  { %636 = vsyncpa [#allocation3], 1 }
  0xbb   :  { %638 = vsyncpa [#allocation3 + $0x1], 1 }
  0xbc   :  { %639 = vsyncpa [#allocation6], 1 }
  0xbd   :  { %640 = vsyncpa [#allocation4], 1 }
  0xbe   :  { %642 = vsyncpa [#allocation4 + $0x1], 1 }

</bundles_post_ra>
